<compile_context>
chip_gen: v6e
topology: v6e:2x2x1
jax: 0.10.0
libtpu: 0.0.40
codegen_flags: <defaults>
</compile_context>

<pallas_src>
import functools

import jax
import jax.numpy as jnp
from jax import lax
from jax.experimental import pallas as pl
from jax.experimental.pallas import tpu as pltpu

KSIZE = 7
PAD = KSIZE // 2
_WHOLE_BLOCK_ELEMS = 40 * 1024          # ~40 vregs of f32


def _tpu_budgets():
    """Per-generation block budgets + scoped-VMEM limit."""
    vmem_bytes = 64 * 1024 * 1024       # conservative default (v7x-sized)
    try:
        info = pltpu.get_tpu_info()
        vmem_bytes = int(getattr(info, "vmem_capacity_bytes", vmem_bytes))
    except Exception:
        pass
    if vmem_bytes >= 100 * 1024 * 1024:             # v5e / v6e: 128 MiB VMEM
        return {"reduce_blk": 6 * 1024 * 1024,
                "apply_blk": 8 * 1024 * 1024,
                "vmem_limit": 64 * 1024 * 1024}
    return {"reduce_blk": 2 * 1024 * 1024,          # v7x: 64 MiB VMEM
            "apply_blk": 3 * 1024 * 1024,
            "vmem_limit": 32 * 1024 * 1024}


def _pick_c_tile(C, hw, itemsize, budget):
    """Largest legal channel tile whose (tile, HW) block fits `budget`.

    Legal tiles (TPU second-to-last block-dim rule): the full C, or any
    multiple of 8 (the trailing ragged block is handled in the kernels)."""
    if C <= 8 or C * hw * itemsize <= budget:
        return int(C)
    tile = (budget // (hw * itemsize)) // 8 * 8
    return int(max(8, min(tile, (C // 8) * 8)))


def _reduce_kernel(curr_ref, stats_ref, *, c_total, ragged, whole_block):
    # curr_ref : VMEM (1, c_blk, HW) input tile (lane-dense).
    # stats_ref: VMEM (1, 2, HW) f32 output block, resident across the channel
    #            axis (row 0 = running channel sum, row 1 = running max).
    c_blk = curr_ref.shape[1]
    hw = curr_ref.shape[2]
    cb = pl.program_id(1)

    @pl.when(cb == 0)
    def _():
        stats_ref[0, 0] = jnp.zeros((hw,), jnp.float32)
        stats_ref[0, 1] = jnp.full((hw,), -jnp.inf, jnp.float32)

    if ragged:
        c_valid = jnp.minimum(c_blk, c_total - cb * c_blk)

    if whole_block:
        # Vectorized whole-block reduce (block fits comfortably in vregs).
        x = curr_ref[0].astype(jnp.float32)                       # (c_blk, HW)
        if ragged:
            row = lax.broadcasted_iota(jnp.int32, (c_blk, hw), 0)
            in_range = row < c_valid
            xs = jnp.where(in_range, x, 0.0)
            xm = jnp.where(in_range, x, -jnp.inf)
        else:
            xs = xm = x
        part_sum = jnp.sum(xs, axis=0)
        part_max = jnp.max(xm, axis=0)
    else:
        # Streamed per-channel reduce, unrolled so the VALUs can co-issue.
        x0 = curr_ref[0, 0].astype(jnp.float32)       # channel 0: always valid

        def body(i, carry):
            s, m = carry
            xi = curr_ref[0, i].astype(jnp.float32)
            si = s + xi
            mi = jnp.maximum(m, xi)
            if ragged:
                ok = i < c_valid
                si = jnp.where(ok, si, s)
                mi = jnp.where(ok, mi, m)
            return si, mi

        part_sum, part_max = lax.fori_loop(1, c_blk, body, (x0, x0), unroll=4)

    stats_ref[0, 0] = stats_ref[0, 0] + part_sum
    stats_ref[0, 1] = jnp.maximum(stats_ref[0, 1], part_max)


def _conv_gate_kernel(w_ref, stats_ref, gate_ref, pad_ref, *, c_total):
    # w_ref    : SMEM (2*7*7,) f32, flat [cin, kh, kw]
    # stats_ref: VMEM (1, 2, H, W) f32  (channel sum, channel max)
    # gate_ref : VMEM (1, H, W) f32
    # pad_ref  : VMEM (2, H+6, W+6) f32 scratch (zero-padded mean/max maps)
    H, W = stats_ref.shape[2], stats_ref.shape[3]

    avg = stats_ref[0, 0] * jnp.float32(1.0 / c_total)
    mx = stats_ref[0, 1]

    # Zero only the 3-wide halo strips; the interior is fully overwritten.
    zrow = jnp.zeros((PAD, W + 2 * PAD), jnp.float32)
    zcol = jnp.zeros((H, PAD), jnp.float32)
    for c in range(2):
        pad_ref[c, 0:PAD, :] = zrow
        pad_ref[c, PAD + H:H + 2 * PAD, :] = zrow
        pad_ref[c, PAD:PAD + H, 0:PAD] = zcol
        pad_ref[c, PAD:PAD + H, PAD + W:W + 2 * PAD] = zcol
    pad_ref[0, PAD:PAD + H, PAD:PAD + W] = avg
    pad_ref[1, PAD:PAD + H, PAD:PAD + W] = mx

    # 14 row-band loads; the 7 kw taps are in-register lane-shifted slices.
    # Independent per-(cin, kh) accumulators + balanced tree sum so the 98
    # multiply-adds are not a single serial dependency chain.
    partials = []
    for c in range(2):
        for kh in range(KSIZE):
            band = pad_ref[c, kh:kh + H, :]                       # (H, W+6)
            base = (c * KSIZE + kh) * KSIZE
            p = band[:, 0:W] * w_ref[base]
            for kw in range(1, KSIZE):
                p = p + band[:, kw:kw + W] * w_ref[base + kw]
            partials.append(p)
    while len(partials) > 1:
        nxt = [partials[i] + partials[i + 1]
               for i in range(0, len(partials) - 1, 2)]
        if len(partials) % 2:
            nxt.append(partials[-1])
        partials = nxt

    gate_ref[0] = jax.nn.sigmoid(partials[0])


def _apply_gate_kernel(gate_ref, prev_ref, out_ref):
    # gate_ref: VMEM (1, 1, HW) f32; prev_ref/out_ref: VMEM (1, c_tile, HW).
    g = gate_ref[0]                                               # (1, HW) f32
    out_ref[0] = (prev_ref[0].astype(jnp.float32) * g).astype(out_ref.dtype)


def spatial_attention_mtf(curr, prev, conv_weight):
    """curr, prev: (N, C, H, W); conv_weight: (1, 2, 7, 7) (no bias)."""
    N, C, H, W = curr.shape
    assert prev.shape == curr.shape
    HW = H * W
    budgets = _tpu_budgets()
    w_flat = conv_weight.reshape(-1).astype(jnp.float32)          # (98,)

    # ---- kernel 1: lane-dense channel sum/max reduction --------------------
    curr_flat = curr.reshape(N, C, HW)
    c_blk = _pick_c_tile(C, HW, curr.dtype.itemsize, budgets["reduce_blk"])
    num_cb = pl.cdiv(C, c_blk)
    ragged = (C % c_blk) != 0
    whole_block = (c_blk * HW) <= _WHOLE_BLOCK_ELEMS

    stats = pl.pallas_call(
        functools.partial(_reduce_kernel, c_total=C, ragged=ragged,
                          whole_block=whole_block),
        out_shape=jax.ShapeDtypeStruct((N, 2, HW), jnp.float32),
        grid_spec=pltpu.PrefetchScalarGridSpec(
            num_scalar_prefetch=0,
            grid=(N, num_cb),                 # reduction (channel) axis last
            in_specs=[pl.BlockSpec((1, c_blk, HW), lambda n, cb: (n, cb, 0))],
            out_specs=pl.BlockSpec((1, 2, HW), lambda n, cb: (n, 0, 0)),
        ),
        compiler_params=pltpu.CompilerParams(
            dimension_semantics=("parallel", "arbitrary"),
            vmem_limit_bytes=budgets["vmem_limit"]),
    )(curr_flat)

    # ---- kernel 2: tiny per-image 7x7 conv + sigmoid gate -------------------
    gate_hw = pl.pallas_call(
        functools.partial(_conv_gate_kernel, c_total=C),
        out_shape=jax.ShapeDtypeStruct((N, H, W), jnp.float32),
        grid_spec=pltpu.PrefetchScalarGridSpec(
            num_scalar_prefetch=0,
            grid=(N,),
            in_specs=[
                pl.BlockSpec(memory_space=pltpu.MemorySpace.SMEM),   # weights
                pl.BlockSpec((1, 2, H, W), lambda n: (n, 0, 0, 0)),
            ],
            out_specs=pl.BlockSpec((1, H, W), lambda n: (n, 0, 0)),
            scratch_shapes=[
                pltpu.VMEM((2, H + 2 * PAD, W + 2 * PAD), jnp.float32)],
        ),
        compiler_params=pltpu.CompilerParams(
            dimension_semantics=("parallel",),
            vmem_limit_bytes=budgets["vmem_limit"]),
    )(w_flat, stats.reshape(N, 2, H, W))

    # ---- kernel 3: lane-dense gating, parallel over batch x channel tiles ---
    c_tile = _pick_c_tile(C, HW, prev.dtype.itemsize, budgets["apply_blk"])
    out_flat = pl.pallas_call(
        _apply_gate_kernel,
        out_shape=jax.ShapeDtypeStruct((N, C, HW), prev.dtype),
        grid_spec=pltpu.PrefetchScalarGridSpec(
            num_scalar_prefetch=0,
            grid=(N, pl.cdiv(C, c_tile)),
            in_specs=[
                pl.BlockSpec((1, 1, HW), lambda n, cb: (n, 0, 0)),
                pl.BlockSpec((1, c_tile, HW), lambda n, cb: (n, cb, 0)),
            ],
            out_specs=pl.BlockSpec((1, c_tile, HW), lambda n, cb: (n, cb, 0)),
        ),
        compiler_params=pltpu.CompilerParams(
            dimension_semantics=("parallel", "parallel"),
            vmem_limit_bytes=budgets["vmem_limit"]),
    )(gate_hw.reshape(N, 1, HW), prev.reshape(N, C, HW))

    return out_flat.reshape(N, C, H, W)


def reference(curr, prev, conv_weight):
    avg_out = jnp.mean(curr, axis=1, keepdims=True)
    max_out = jnp.max(curr, axis=1, keepdims=True)
    y = jnp.concatenate([avg_out, max_out], axis=1)               # (N, 2, H, W)
    y = lax.conv_general_dilated(
        y, conv_weight,
        window_strides=(1, 1),
        padding=[(PAD, PAD), (PAD, PAD)],
        dimension_numbers=("NCHW", "OIHW", "NCHW"),
    )
    return jax.nn.sigmoid(y) * prev


if __name__ == "__main__":
    key = jax.random.PRNGKey(0)
    k1, k2, k3 = jax.random.split(key, 3)

    N, C, H, W = 2, 4, 16, 16
    curr = jax.random.normal(k1, (N, C, H, W), dtype=jnp.float32)
    prev = jax.random.normal(k2, (N, C, H, W), dtype=jnp.float32)

    # Deterministic conv weight init (kaiming-uniform-like scale), (1, 2, 7, 7).
    fan_in = 2 * KSIZE * KSIZE
    bound = 1.0 / jnp.sqrt(jnp.float32(fan_in))
    conv_weight = jax.random.uniform(
        k3, (1, 2, KSIZE, KSIZE), dtype=jnp.float32, minval=-bound, maxval=bound)

    out = spatial_attention_mtf(curr, prev, conv_weight)
    out = jax.block_until_ready(out)

    ref = reference(curr, prev, conv_weight)
    assert out.shape == (N, C, H, W)
    assert jnp.allclose(out, ref, atol=1e-5, rtol=1e-5), (
        float(jnp.max(jnp.abs(out - ref))))

    print("KERNEL_OK")
</pallas_src>

<mosaic_0001>
module attributes {stable_mosaic.version = 11 : i64} {
  func.func @_reduce_kernel(%arg0: i32, %arg1: i32, %arg2: memref<1x4x256xf32, #tpu.memory_space<vmem>>, %arg3: memref<1x2x256xf32, #tpu.memory_space<vmem>>) attributes {dimension_semantics = [#tpu.dimension_semantics<parallel>, #tpu.dimension_semantics<arbitrary>], iteration_bounds = array<i64: 2, 1>, scalar_prefetch = 0 : i64, scratch_operands = 0 : i64, tpu.core_type = #tpu.core_type<tc>, window_params = [{transform_indices = @transform_0, window_bounds = array<i64: 1, 4, 256>}, {transform_indices = @transform_1, window_bounds = array<i64: 1, 2, 256>}]} {
    %c0_i32 = arith.constant 0 : i32
    %0 = arith.cmpi eq, %arg1, %c0_i32 : i32
    %1 = arith.extui %0 : i1 to i32
    %c0_i32_0 = arith.constant 0 : i32
    %2 = arith.cmpi ne, %1, %c0_i32_0 : i32
    scf.if %2 {
      %cst_15 = arith.constant 0.000000e+00 : f32
      %19 = vector.broadcast %cst_15 : f32 to vector<256xf32>
      %c0_16 = arith.constant 0 : index
      %c0_17 = arith.constant 0 : index
      %c0_18 = arith.constant 0 : index
      %20 = vector.load %arg3[%c0_16, %c0_17, %c0_18] : memref<1x2x256xf32, #tpu.memory_space<vmem>>, vector<1x1x256xf32>
      %21 = vector.shape_cast %20 : vector<1x1x256xf32> to vector<256xf32>
      %22 = vector.shape_cast %19 : vector<256xf32> to vector<1x1x256xf32>
      tpu.vector_store %arg3[%c0_16, %c0_17, %c0_18], %22 {strides = array<i32>} : memref<1x2x256xf32, #tpu.memory_space<vmem>>, vector<1x1x256xf32>,
      %cst_19 = arith.constant 0xFF800000 : f32
      %23 = vector.broadcast %cst_19 : f32 to vector<256xf32>
      %c0_20 = arith.constant 0 : index
      %c1_21 = arith.constant 1 : index
      %c0_22 = arith.constant 0 : index
      %24 = vector.load %arg3[%c0_20, %c1_21, %c0_22] : memref<1x2x256xf32, #tpu.memory_space<vmem>>, vector<1x1x256xf32>
      %25 = vector.shape_cast %24 : vector<1x1x256xf32> to vector<256xf32>
      %26 = vector.shape_cast %23 : vector<256xf32> to vector<1x1x256xf32>
      tpu.vector_store %arg3[%c0_20, %c1_21, %c0_22], %26 {strides = array<i32>} : memref<1x2x256xf32, #tpu.memory_space<vmem>>, vector<1x1x256xf32>,
    } else {
    }
    %c0 = arith.constant 0 : index
    %c0_1 = arith.constant 0 : index
    %c0_2 = arith.constant 0 : index
    %3 = vector.load %arg2[%c0, %c0_1, %c0_2] : memref<1x4x256xf32, #tpu.memory_space<vmem>>, vector<1x4x256xf32>
    %4 = vector.shape_cast %3 : vector<1x4x256xf32> to vector<4x256xf32>
    %cst = arith.constant dense<0.000000e+00> : vector<256xf32>
    %5 = vector.multi_reduction <add>, %4, %cst [0] : vector<4x256xf32> to vector<256xf32>
    %cst_3 = arith.constant dense<0xFF800000> : vector<256xf32>
    %6 = vector.multi_reduction <maximumf>, %4, %cst_3 [0] : vector<4x256xf32> to vector<256xf32>
    %c0_4 = arith.constant 0 : index
    %c0_5 = arith.constant 0 : index
    %c0_6 = arith.constant 0 : index
    %7 = vector.load %arg3[%c0_4, %c0_5, %c0_6] : memref<1x2x256xf32, #tpu.memory_space<vmem>>, vector<1x1x256xf32>
    %8 = vector.shape_cast %7 : vector<1x1x256xf32> to vector<256xf32>
    %9 = arith.addf %8, %5 : vector<256xf32>
    %c0_7 = arith.constant 0 : index
    %c0_8 = arith.constant 0 : index
    %c0_9 = arith.constant 0 : index
    %10 = vector.load %arg3[%c0_7, %c0_8, %c0_9] : memref<1x2x256xf32, #tpu.memory_space<vmem>>, vector<1x1x256xf32>
    %11 = vector.shape_cast %10 : vector<1x1x256xf32> to vector<256xf32>
    %12 = vector.shape_cast %9 : vector<256xf32> to vector<1x1x256xf32>
    tpu.vector_store %arg3[%c0_7, %c0_8, %c0_9], %12 {strides = array<i32>} : memref<1x2x256xf32, #tpu.memory_space<vmem>>, vector<1x1x256xf32>,
    %c0_10 = arith.constant 0 : index
    %c1 = arith.constant 1 : index
    %c0_11 = arith.constant 0 : index
    %13 = vector.load %arg3[%c0_10, %c1, %c0_11] : memref<1x2x256xf32, #tpu.memory_space<vmem>>, vector<1x1x256xf32>
    %14 = vector.shape_cast %13 : vector<1x1x256xf32> to vector<256xf32>
    %15 = arith.maximumf %14, %6 : vector<256xf32>
    %c0_12 = arith.constant 0 : index
    %c1_13 = arith.constant 1 : index
    %c0_14 = arith.constant 0 : index
    %16 = vector.load %arg3[%c0_12, %c1_13, %c0_14] : memref<1x2x256xf32, #tpu.memory_space<vmem>>, vector<1x1x256xf32>
    %17 = vector.shape_cast %16 : vector<1x1x256xf32> to vector<256xf32>
    %18 = vector.shape_cast %15 : vector<256xf32> to vector<1x1x256xf32>
    tpu.vector_store %arg3[%c0_12, %c1_13, %c0_14], %18 {strides = array<i32>} : memref<1x2x256xf32, #tpu.memory_space<vmem>>, vector<1x1x256xf32>,
    return
  }
  func.func @transform_0(%arg0: i32, %arg1: i32) -> (i32, i32, i32) {
    %c0_i32 = arith.constant 0 : i32
    %c0_i32_0 = arith.constant 0 : i32
    return %arg0, %arg1, %c0_i32 : i32, i32, i32
  }
  func.func @transform_1(%arg0: i32, %arg1: i32) -> (i32, i32, i32) {
    %c0_i32 = arith.constant 0 : i32
    %c0_i32_0 = arith.constant 0 : i32
    %c0_i32_1 = arith.constant 0 : i32
    return %arg0, %c0_i32, %c0_i32_0 : i32, i32, i32
  }
}

</mosaic_0001>

<bundles_post_ra>
// kernel: tpu_custom_call.1
= control target key start
LH: loop header
LB: loop body
LE: loop exit
PB: predicated region body
PF: predicated region fallthrough
CT: control target
= control target key end

     0   :  { %6 = vsyncpa [#allocation3], 0  ;;  %s709_s0 = inlined_call_operand.hbm [shape: f32[2,4,256], index: 0, kind: input, shape index: {}]   ;;  %s710_s1 = inlined_call_operand.hbm [shape: f32[2,2,256], index: 1, kind: output, shape index: {}]  }
   0x1   :  { %8 = vsyncpa [#allocation3 + $0x1], 0 }
   0x2   :  { %9 = vsyncpa [#allocation4], 0 }
   0x3   :  { %11 = vsyncpa [#allocation4 + $0x1], 0  ;;  %s547_s6 = smov 0   ;;  %s549_s7 = smov 0  }
   0x4   :  { %s551_s8 = smov 0   ;;  %s553_s9 = smov 0  }
   0x5   :  { %s555_s10 = smov 0   ;;  %s557_s11 = smov 0  }
   0x6 LB: > { %s336_s12 = sadd.s32 4294967295, %s530_s11   ;;  %s337_s13 = sadd.s32 4294967294, %s530_s11   ;;  %s530_s11 = sphi %s557_s11, %s17_s11   ;;  %s526_s10 = sphi %s555_s10, %s724_s10   ;;  %s522_s9 = sphi %s553_s9, %s723_s9   ;;  %s518_s8 = sphi %s551_s8, %s722_s8   ;;  %s514_s7 = sphi %s549_s7, %s721_s7   ;;  %s510_s6 = sphi %s547_s6, %s720_s6  }
   0x7   : > { %s29_s14 = sadd.s32 1, %s526_s10  ;;  %s38_s15 = sadd.s32 1, %s518_s8 }
   0x8   : > { %p31_p0 = scmp.ge.s32.totalorder %s29_s14, 2  ;;  %p45_p1 = scmp.ne.s32.totalorder %s518_s8, %s514_s7 }
   0x9   : > { %p46_p2 = scmp.eq.s32.totalorder %s530_s11, 0  ;;  %p51_p3 = scmp.ne.s32.totalorder %s514_s7, %s510_s6 }
   0xa   : > { %s726_s14 = smov (%p31_p0, %s29_s14), 0  ;;  %p52_p5 = scmp.eq.s32.totalorder %s336_s12, 0 }
   0xb   : > { %p588_p4 = por %p46_p2, %p45_p1  ;;  %s33_s17 = ssub.s32 %s526_s10, %s726_s14 }
   0xc   : > { %p75_p6 = scmp.eq.s32.totalorder %s336_s12, 1  ;;  %p36_p7 = scmp.eq.s32.totalorder %s33_s17, 0 }
   0xd   : > { %p594_p8 = por %p52_p5, %p51_p3  ;;  %p81_p10 = scmp.eq.s32.totalorder %s337_s13, 1 }
   0xe   : > { %p598_p9 = por %p75_p6, %p45_p1  ;;  %p368_p13 = scmp.lt.s32.totalorder %s530_s11, 2 }
   0xf   : > { %s603_s20 = scalar_select %p36_p7, %s518_s8, %s38_s15  }
  0x10   : > { %p605_p11 = por %p81_p10, %p51_p3  ;;  %s101_s22 = sand.u32 1, %s518_s8  }
  0x11   : > { %s340_s23 = sshll.u32 %s101_s22, 3  ;;  %s354_s24 = sshll.u32 %s526_s10, 7 }
  0x12   : > { %s714_s21 = scalar_select %p605_p11, 1, 0 }
  0x13   : > { %s113_s27 = scalar_lea.hbm %s709_s0, %s354_s24  ;;  %s105_s28 = scalar_lea.vmem [#allocation2], %s340_s23 }
  0x14   : > { %s115_s29 = sshll.u32 %s105_s28, 4  ;;  %p618_p0 = pnand %p368_p13, %p588_p4  ;;  %s116_s29 = int_to_ptr.vmem [resolvable:$true] %s115_s29 }
  0x15   : > { %p343_p1 = scmp.ge.s32.totalorder %s530_s11, 1  ;;  %p120_p2 = scmp.lt.s32.totalorder %s530_s11, 3 }
  0x16   : > { %s102_s2 = scalar_lea.sflag [#allocation3], %s101_s22  ;;  %p424_p3 = pneg %p618_p0 }
  0x17   : > { %s435_s3 = scalar_lea.vmem %s116_s29, 128  ;;  %s532_s4 = smov [#allocation2]  }
  0x18   : > { %p436_p5 = scmp.ne.s32.totalorder %s116_s29, %s435_s3  ;;  %s440_s5 = sshll.u32 %s532_s4, 4  ;;  %s441_s5 = int_to_ptr.vmem [resolvable:$false] %s440_s5 }
  0x19   : > { %s442_s12 = scalar_lea.vmem %s441_s5, 256  ;;  %p443_p10 = scmp.lt.s32.totalorder %s116_s29, %s441_s5 }
  0x1a   : > { %p438_p6 = pnand %p436_p5, %p424_p3  ;;  %p444_p12 = scmp.lt.s32.totalorder %s442_s12, %s435_s3 }
  0x1c   : > { %p439_p7 = pneg %p438_p6  ;;  %p445_p4 = por %p444_p12, %p443_p10 }
  0x1e   : > { %p446_p13 = pnand %p445_p4, %p439_p7 }
  0x20   : > { %449 = shalt.err (!%p446_p13)
}
  0x21   : > { %363 = dma.hbm_to_vmem [thread:$0]  (!%p618_p0), %s113_s27, 128, %s116_s29, %s102_s2  }
  0x22   : > { %p121_p11 = pnand %p343_p1, %p120_p2 }
  0x23   : > { %s633_s13 = sand.u32 (!%p121_p11), 1, %s514_s7  }
  0x24   : > { %124 = sbr.rel (%p121_p11) target bundleno = 80 (0x50), region = 24  ;;  %s344_s15 = sshll.u32 (!%p121_p11), %s633_s13, 3 }
  0x25   : > { %s127_s16 = scalar_lea.sflag (!%p121_p11), [#allocation3], %s633_s13  ;;  %s130_s17 = scalar_lea.vmem (!%p121_p11), [#allocation2], %s344_s15 }
  0x29   : > { %501 = dma.done.wait (%p594_p8), %s127_s16, 128  }
  0x2a   : > { %503 = vsyncadd (%p594_p8), %s127_s16, 4294967168  ;;  %s345_s22 = sshll.u32 %s633_s13, 2  ;;  %v153_v0 = vlaneseq  ;;  %v533_v2 = vmov 0.0   ;;  %v534_v3 = vmov -inf   ;;  %vm164_vm1 = vcmask 1043456   ;;  %v160_v4 = vld [vmem:[%s130_s17] sm:$0xff] }
  0x2b   : > { %s646_s23 = scalar_lea.vmem [#allocation5], %s345_s22  ;;  %v162_v5 = vcombine.high %v160_v4, %v160_v4  ;;  %v165_v6 = vsel %vm164_vm1, %v160_v4, 0.0  ;;  %v179_v7 = vsel %vm164_vm1, %v160_v4, -inf  ;;  %v535_v16 = vmov 1966171168   ;;  %s355_s18 = sshll.u32 %s522_s9, 6 }
  0x2c   : > { %vm642_vm0 = vcmp.lt.s32.totalorder %v153_v0, 256  ;;  %v166_v8 = vrot.slane %v165_v6, 4  ;;  %v180_v9 = vrot.slane %v179_v7, 4  ;;  %v198_v17 = vunpack.c.l.s4 %v535_v16  ;;  %s255_s24 = sshll.u32 %s646_s23, 4  ;;  %s661_s27 = scalar_lea.hbm %s710_s1, %s355_s18  ;;  %s256_s24 = int_to_ptr.vmem [resolvable:$true] %s255_s24 }
  0x2d   : > { %157 = vst.msk [vmem:[%s646_s23] ss:$2 sm:$0x3] %vm642_vm0, %v533_v2  ;;  %346 = vst.msk [vmem:[%s646_s23 + $0x1] ss:$2 sm:$0x3] %vm642_vm0, %v534_v3 }
  0x2e   : > { %v172_v10 = vsel %vm164_vm1, %v162_v5, 0.0  ;;  %v186_v11 = vsel %vm164_vm1, %v162_v5, -inf  ;;  %v167_v12 = vadd.f32 %v166_v8, %v165_v6  ;;  %v181_v14 = vmax.f32 %v179_v7, %v180_v9  ;;  %s241_s9 = scalar_lea.sflag [#allocation4], %s633_s13  ;;  %s450_s28 = scalar_lea.vmem %s256_s24, 64 }
  0x2f   : > { %v173_v13 = vrot.slane %v172_v10, 4  ;;  %v187_v15 = vrot.slane %v186_v11, 4  ;;  %v199_v26 = vunpack.c.0.s8 %v198_v17  ;;  %v201_v27 = vshrl.u32 %v153_v0, 7  ;;  %p451_p8 = scmp.ne.s32.totalorder %s256_s24, %s450_s28  ;;  %s536_s29 = smov [#allocation5]  }
  0x30   : > { %v168_v18 = vrot.slane %v167_v12, 2  ;;  %v182_v20 = vrot.slane %v181_v14, 2  ;;  %s454_s30 = sshll.u32 %s536_s29, 4  ;;  %s455_s30 = int_to_ptr.vmem [resolvable:$false] %s454_s30 }
  0x31   : > { %v174_v19 = vadd.f32 %v173_v13, %v172_v10  ;;  %v188_v21 = vmax.f32 %v186_v11, %v187_v15  ;;  %v202_v36 = vsub.s32 %v199_v26, %v201_v27  ;;  %p452_p11 = pnand %p451_p8, %p598_p9  ;;  %s456_s2 = scalar_lea.vmem %s455_s30, 128 }
  0x32   : > { %v169_v22 = vadd.f32 %v168_v18, %v167_v12  ;;  %v183_v24 = vmax.f32 %v181_v14, %v182_v20  ;;  %p457_p0 = scmp.lt.s32.totalorder %s256_s24, %s455_s30  ;;  %p458_p1 = scmp.lt.s32.totalorder %s456_s2, %s450_s28 }
  0x33   : > { %v175_v23 = vrot.slane %v174_v19, 2  ;;  %v189_v25 = vrot.slane %v188_v21, 2  ;;  %p453_p12 = pneg %p452_p11 }
  0x34   : > { %v170_v28 = vrot.slane %v169_v22, 1  ;;  %v184_v30 = vrot.slane %v183_v24, 1  ;;  %v193_v43 = vld [vmem:[%s646_s23] ss:$2 sm:$0x3]  ;;  %p459_p2 = por %p458_p1, %p457_p0 }
  0x35   : > { %v176_v29 = vadd.f32 %v175_v23, %v174_v19  ;;  %v190_v31 = vmax.f32 %v188_v21, %v189_v25  ;;  %v347_v44 = vld [vmem:[%s646_s23 + $0x1] ss:$2 sm:$0x3] }
  0x36   : > { %v171_v32 = vadd.f32 %v170_v28, %v169_v22  ;;  %v185_v34 = vmax.f32 %v183_v24, %v184_v30  ;;  %p460_p3 = pnand %p459_p2, %p453_p12 }
  0x37   : > { %v177_v33 = vrot.slane %v176_v29, 1  ;;  %v191_v35 = vrot.slane %v190_v31, 1 }
  0x39   : > { %v178_v37 = vadd.f32 %v177_v33, %v176_v29  ;;  %v192_v38 = vmax.f32 %v190_v31, %v191_v35 }
  0x3b   : > { %v196_v39 = vcombine.low %v171_v32, %v178_v37  ;;  %v222_v40 = vcombine.low %v185_v34, %v192_v38 }
  0x3d   : > { %v203_v41 = vrot.slane %v196_v39, %v202_v36  ;;  %v229_v42 = vrot.slane %v222_v40, %v202_v36 }
  0x3f   : > { %v210_v45 = vrot.slane %v203_v41, %v202_v36  ;;  %v236_v46 = vrot.slane %v229_v42, %v202_v36 }
  0x41   : > { %v212_v47 = vadd.f32 %v210_v45, %v193_v43  ;;  %v238_v48 = vmax.f32 %v347_v44, %v236_v46 }
  0x43   : > { %217 = vst.msk [vmem:[%s646_s23] ss:$2 sm:$0x3] %vm642_vm0, %v212_v47  ;;  %348 = vst.msk [vmem:[%s646_s23 + $0x1] ss:$2 sm:$0x3] %vm642_vm0, %v238_v48 }
  0x44   : > { %463 = shalt.err (!%p460_p3)
}
  0x45   : > { %s464_s3 = scalar_lea.hbm %s661_s27, 64  ;;  %s468_s12 = scalar_lea.hbm %s710_s1, 128 }
  0x46   : > { %p465_p5 = scmp.ne.s32.totalorder %s661_s27, %s464_s3  ;;  %p469_p10 = scmp.lt.s32.totalorder %s661_s27, %s710_s1 }
  0x47   : > { %p470_p4 = scmp.lt.s32.totalorder %s468_s12, %s464_s3 }
  0x48   : > { %p466_p6 = pnand %p465_p5, %p598_p9 }
  0x49   : > { %p471_p13 = por %p470_p4, %p469_p10 }
  0x4a   : > { %p467_p7 = pneg %p466_p6 }
  0x4c   : > { %p472_p8 = pnand %p471_p13, %p467_p7 }
  0x4e   : > { %475 = shalt.err (!%p472_p8)
}
  0x4f   : > { %358 = dma.vmem_to_hbm [thread:$0]  (%p598_p9), %s256_s24, 64, %s661_s27, %s241_s9  }
  0x50 PF: > { %s267_s16 = sand.u32 1, %s510_s6   ;;  %p718_p11 = scmp.ne.s32.totalorder %s714_s21, 0 }
  0x51   : > { %p719_p12 = scmp.ge.s32.totalorder %s530_s11, 2  ;;  %s268_s17 = scalar_lea.sflag [#allocation4], %s267_s16 }
  0x53   : > { %p365_p0 = pnand %p719_p12, %p718_p11 }
  0x55   : > { %p366_p1 = pneg %p365_p0 }
  0x57   : > { %505 = dma.done.wait (%p366_p1), %s268_s17, 64  }
  0x58   : > { %507 = vsyncadd (%p366_p1), %s268_s17, 4294967232  ;;  %s17_s11 = sadd.s32 1, %s530_s11   ;;  %s720_s6 = smov %s514_s7 }
  0x59   : > { %p14_p2 = scmp.ge.s32.totalorder %s17_s11, 4   ;;  %s721_s7 = smov %s518_s8 }
  0x5a   : > { %s722_s8 = smov %s603_s20  ;;  %s723_s9 = smov %s526_s10 }
  0x5b   : > { %s724_s10 = smov %s726_s14  ;;  %16 = sbr.rel (!%p14_p2) target bundleno = 6 (0x6), region = 75 }
  0x60   :  { %273 = vsyncpa [#allocation3], 1 }
  0x61   :  { %275 = vsyncpa [#allocation3 + $0x1], 1 }
  0x62   :  { %276 = vsyncpa [#allocation4], 1 }
  0x63   :  { %278 = vsyncpa [#allocation4 + $0x1], 1 }

</bundles_post_ra>
